<compile_context>
chip_gen: v7x
topology: tpu7x:2x2x1
jax: 0.10.0
libtpu: 0.0.40
codegen_flags: <defaults>
</compile_context>

<pallas_src>
import copy
import functools

import jax
import jax.numpy as jnp
from jax.experimental import pallas as pl
from jax.experimental.pallas import tpu as pltpu


# ----------------------------------------------------------------------------
# Pallas LayerNorm kernel (biased variance, eps added OUTSIDE the sqrt,
# exactly like the PyTorch module).
# ----------------------------------------------------------------------------
def _layernorm_kernel(x_ref, a_ref, b_ref, o_ref, *, eps, d, n_pack):
    """LayerNorm over logical rows of width `d`.

    x_ref: (TM, n_pack*d) tile.  When n_pack > 1 each sublane row packs
    `n_pack` consecutive logical rows along the lane axis (lane-dense stores
    for small d_model).  a_ref/b_ref: (1, n_pack*d), pre-tiled in the wrapper.
    """
    xn = x_ref[...]          # native dtype; no full-tile f32 copy up front
    a = a_ref[...]           # f32
    b = b_ref[...]           # f32

    if n_pack == 1:
        # Standard path (d_model is the lane axis).
        mean = jnp.mean(xn, axis=-1, keepdims=True, dtype=jnp.float32)
        centered = xn.astype(jnp.float32) - mean          # single reused f32 temp
        var = jnp.mean(centered * centered, axis=-1, keepdims=True)
        # Exact divide on the tiny (TM, 1) column -> O(rows) work, fully hidden.
        inv = 1.0 / (jnp.sqrt(var) + eps)                 # eps outside sqrt
        o_ref[...] = ((centered * inv) * a + b).astype(o_ref.dtype)
    else:
        # Lane-packed path: segment the 128-wide slab into n_pack rows of d.
        tm = xn.shape[0]
        x3 = xn.reshape(tm, n_pack, d)
        mean = jnp.mean(x3, axis=-1, keepdims=True, dtype=jnp.float32)
        centered = x3.astype(jnp.float32) - mean
        var = jnp.mean(centered * centered, axis=-1, keepdims=True)
        inv = 1.0 / (jnp.sqrt(var) + eps)
        norm = (centered * inv).reshape(tm, n_pack * d)
        o_ref[...] = (norm * a + b).astype(o_ref.dtype)


def _round_up(x, m):
    return ((x + m - 1) // m) * m


def _vmem_capacity_bytes():
    # Generation-aware sizing: v7x has only 64 MiB VMEM per TensorCore
    # (v5e/v6e: 128 MiB).  Fall back to the most conservative figure when the
    # query is unavailable (e.g. interpret mode on a non-TPU host).
    try:
        return int(pltpu.get_tpu_info().vmem_capacity_bytes)
    except Exception:
        return 64 * 1024 * 1024


def pallas_layernorm(x, a, b, *, eps=1e-6):
    """LayerNorm over the last axis of x ([B, S, D]) as a Pallas TPU kernel."""
    orig_shape = x.shape
    d = orig_shape[-1]
    rows = 1
    for s in orig_shape[:-1]:
        rows *= int(s)

    # Lane-dense re-layout for small d_model: pack 128//d consecutive rows
    # into one 128-wide lane slab (contiguous reshape, no data movement in the
    # wrapper) so HBM stores are full-width vst instead of masked vst.msk.
    n_pack = 1
    if d < 128 and 128 % d == 0 and rows % (128 // d) == 0:
        n_pack = 128 // d
    # TODO(synk): d_model >= 128 but not a multiple of 128 still lowers to
    #             masked partial stores; a pad-to-128 path would need a masked
    #             reduction plus an extra HBM pass, so it is left as-is.

    L = n_pack * d
    prow = rows // n_pack
    x2 = x.reshape(prow, L)                                   # free reshape
    a2 = jnp.tile(a.reshape(-1), n_pack).reshape(1, L).astype(jnp.float32)
    b2 = jnp.tile(b.reshape(-1), n_pack).reshape(1, L).astype(jnp.float32)

    itemsize = jnp.dtype(x2.dtype).itemsize
    cap = _vmem_capacity_bytes()
    # Total per-step budget (I/O double-buffers + f32 temporaries), safe on v7x.
    budget = min(32 * 1024 * 1024, cap // 2)
    # 2x double-buffered input + 2x output native-dtype tiles, plus ~3 f32
    # full-tile temporaries (centered / square / output staging).
    per_row = 4 * L * itemsize + 3 * L * 4
    tm = max(8, min(2048, budget // max(per_row, 1)))
    tm = (tm // 8) * 8
    if prow <= tm:
        tm = prow                      # single step; full-extent block is legal
        grid = 1
    else:
        # >= 8 grid steps so both v7x TensorCores get balanced work, while
        # keeping tiles >= 512 rows so the ~0.35 us/step overhead stays amortized.
        tm = min(tm, max(512, _round_up(pl.cdiv(prow, 8), 8)))
        tm = max(8, (tm // 8) * 8)
        grid = pl.cdiv(prow, tm)

    vmem_limit = int(min(40 * 1024 * 1024, cap // 2 + 8 * 1024 * 1024))

    cost = pl.CostEstimate(
        flops=7 * rows * d,
        transcendentals=2 * rows,
        bytes_accessed=2 * rows * d * itemsize + 2 * L * 4,
    )

    # Note: input_output_aliases={0: 0} would drop one HBM allocation when x is
    # dead after the LN; not used here because the caller may still hold x.
    out = pl.pallas_call(
        functools.partial(_layernorm_kernel, eps=eps, d=d, n_pack=n_pack),
        out_shape=jax.ShapeDtypeStruct((prow, L), x.dtype),
        grid_spec=pltpu.PrefetchScalarGridSpec(
            num_scalar_prefetch=0,
            grid=(grid,),
            in_specs=[
                pl.BlockSpec((tm, L), lambda i: (i, 0)),   # x row tile
                pl.BlockSpec((1, L), lambda i: (0, 0)),    # scale a
                pl.BlockSpec((1, L), lambda i: (0, 0)),    # bias b
            ],
            out_specs=pl.BlockSpec((tm, L), lambda i: (i, 0)),
        ),
        compiler_params=pltpu.CompilerParams(
            dimension_semantics=("parallel",),
            vmem_limit_bytes=vmem_limit,
        ),
        cost_estimate=cost,
    )(x2, a2, b2)

    return out.reshape(orig_shape)


# ----------------------------------------------------------------------------
# Encoder: loop over N cloned layers, then the Pallas LayerNorm.
# ----------------------------------------------------------------------------
def clones(layer, n):
    # mirrors the torch `clones` helper (deep-copies a layer callable N times)
    return [copy.deepcopy(layer) for _ in range(n)]


class Encoder:
    def __init__(self, layer, n, size, eps=1e-6):
        # `layer` is a callable layer(x, mask) -> x, cloned N times,
        # exactly like nn.ModuleList(clones(Layer, N)) in the source.
        self.layers = clones(layer, n)
        self.size = size
        self.eps = eps
        # LayerNorm parameters: a = ones(size), b = zeros(size)
        self.a = jnp.ones((size,), jnp.float32)
        self.b = jnp.zeros((size,), jnp.float32)

    def __call__(self, x, mask):
        for layer in self.layers:
            x = layer(x, mask)
        return pallas_layernorm(x, self.a, self.b, eps=self.eps)


# Stand-in layer: the original `Layer` is an external constructor argument
# whose forward is not defined in the provided source.
class _IdentityLayer:
    def __init__(self, size):
        self.size = size

    def __call__(self, x, mask):
        return x


# ----------------------------------------------------------------------------
# Demo / self-check
# ----------------------------------------------------------------------------
def _reference_layernorm(x, a, b, eps=1e-6):
    mean = jnp.mean(x, axis=-1, keepdims=True)
    var = jnp.mean((x - mean) ** 2, axis=-1, keepdims=True)
    norm = (x - mean) / (jnp.sqrt(var) + eps)
    return a * norm + b


def _check(batch, seq, d_model, n_layers):
    key = jax.random.PRNGKey(0)
    x = jax.random.normal(key, (batch, seq, d_model), dtype=jnp.float32)
    mask = jnp.ones((batch, 1, seq), dtype=jnp.float32)  # 1 = token, 0 = PAD

    encoder = Encoder(_IdentityLayer(d_model), n_layers, size=d_model, eps=1e-6)
    out = jax.block_until_ready(encoder(x, mask))

    ref = x
    for _ in range(n_layers):
        ref = ref  # identity layers
    ref = _reference_layernorm(ref, encoder.a, encoder.b, eps=encoder.eps)

    assert out.shape == (batch, seq, d_model)
    assert jnp.allclose(out, ref, atol=1e-4, rtol=1e-4), (
        f"mismatch vs reference (d_model={d_model})")


if __name__ == "__main__":
    _check(2, 8, 32, 2)    # small d_model -> lane-packed path (4 rows / slab)
    _check(2, 8, 128, 2)   # d_model multiple of 128 -> standard path
    print("KERNEL_OK")
</pallas_src>

<mosaic_0001>
module attributes {stable_mosaic.version = 11 : i64} {
  func.func @_layernorm_kernel(%arg0: i32, %arg1: memref<4x128xf32, #tpu.memory_space<vmem>>, %arg2: memref<1x128xf32, #tpu.memory_space<vmem>>, %arg3: memref<1x128xf32, #tpu.memory_space<vmem>>, %arg4: memref<4x128xf32, #tpu.memory_space<vmem>>) attributes {dimension_semantics = [#tpu.dimension_semantics<parallel>], iteration_bounds = array<i64: 1>, scalar_prefetch = 0 : i64, scratch_operands = 0 : i64, tpu.core_type = #tpu.core_type<tc>, window_params = [{transform_indices = @transform_0, window_bounds = array<i64: 4, 128>}, {pipeline_mode = #tpu.pipeline_mode<synchronous>, transform_indices = @transform_1, window_bounds = array<i64: 1, 128>}, {pipeline_mode = #tpu.pipeline_mode<synchronous>, transform_indices = @transform_2, window_bounds = array<i64: 1, 128>}, {transform_indices = @transform_3, window_bounds = array<i64: 4, 128>}]} {
    %c0 = arith.constant 0 : index
    %c0_0 = arith.constant 0 : index
    %0 = vector.load %arg1[%c0, %c0_0] : memref<4x128xf32, #tpu.memory_space<vmem>>, vector<4x128xf32>
    %c0_1 = arith.constant 0 : index
    %c0_2 = arith.constant 0 : index
    %1 = vector.load %arg2[%c0_1, %c0_2] : memref<1x128xf32, #tpu.memory_space<vmem>>, vector<1x128xf32>
    %c0_3 = arith.constant 0 : index
    %c0_4 = arith.constant 0 : index
    %2 = vector.load %arg3[%c0_3, %c0_4] : memref<1x128xf32, #tpu.memory_space<vmem>>, vector<1x128xf32>
    %3 = vector.shape_cast %0 : vector<4x128xf32> to vector<4x4x32xf32>
    %cst = arith.constant dense<0.000000e+00> : vector<4x4xf32>
    %4 = vector.multi_reduction <add>, %3, %cst [2] : vector<4x4x32xf32> to vector<4x4xf32>
    %5 = vector.shape_cast %4 : vector<4x4xf32> to vector<4x4x1xf32>
    %cst_5 = arith.constant 3.200000e+01 : f32
    %6 = vector.broadcast %cst_5 : f32 to vector<4x4x1xf32>
    %7 = arith.divf %5, %6 : vector<4x4x1xf32>
    %8 = vector.broadcast %7 : vector<4x4x1xf32> to vector<4x4x32xf32>
    %9 = arith.subf %3, %8 : vector<4x4x32xf32>
    %10 = arith.mulf %9, %9 : vector<4x4x32xf32>
    %cst_6 = arith.constant dense<0.000000e+00> : vector<4x4xf32>
    %11 = vector.multi_reduction <add>, %10, %cst_6 [2] : vector<4x4x32xf32> to vector<4x4xf32>
    %12 = vector.shape_cast %11 : vector<4x4xf32> to vector<4x4x1xf32>
    %cst_7 = arith.constant 3.200000e+01 : f32
    %13 = vector.broadcast %cst_7 : f32 to vector<4x4x1xf32>
    %14 = arith.divf %12, %13 : vector<4x4x1xf32>
    %15 = math.sqrt %14 : vector<4x4x1xf32>
    %cst_8 = arith.constant 9.99999997E-7 : f32
    %16 = vector.broadcast %cst_8 : f32 to vector<4x4x1xf32>
    %17 = arith.addf %15, %16 : vector<4x4x1xf32>
    %cst_9 = arith.constant 1.000000e+00 : f32
    %18 = vector.broadcast %cst_9 : f32 to vector<4x4x1xf32>
    %19 = arith.divf %18, %17 : vector<4x4x1xf32>
    %20 = vector.broadcast %19 : vector<4x4x1xf32> to vector<4x4x32xf32>
    %21 = arith.mulf %9, %20 : vector<4x4x32xf32>
    %22 = vector.shape_cast %21 : vector<4x4x32xf32> to vector<4x128xf32>
    %23 = vector.broadcast %1 : vector<1x128xf32> to vector<4x128xf32>
    %24 = arith.mulf %22, %23 : vector<4x128xf32>
    %25 = vector.broadcast %2 : vector<1x128xf32> to vector<4x128xf32>
    %26 = arith.addf %24, %25 : vector<4x128xf32>
    %c0_10 = arith.constant 0 : index
    %c0_11 = arith.constant 0 : index
    %27 = vector.load %arg4[%c0_10, %c0_11] : memref<4x128xf32, #tpu.memory_space<vmem>>, vector<4x128xf32>
    tpu.vector_store %arg4[%c0_10, %c0_11], %26 {strides = array<i32>} : memref<4x128xf32, #tpu.memory_space<vmem>>, vector<4x128xf32>,
    return
  }
  func.func @transform_0(%arg0: i32) -> (i32, i32) {
    %c0_i32 = arith.constant 0 : i32
    %c0_i32_0 = arith.constant 0 : i32
    return %arg0, %c0_i32 : i32, i32
  }
  func.func @transform_1(%arg0: i32) -> (i32, i32) {
    %c0_i32 = arith.constant 0 : i32
    %c0_i32_0 = arith.constant 0 : i32
    %c0_i32_1 = arith.constant 0 : i32
    return %c0_i32, %c0_i32_0 : i32, i32
  }
  func.func @transform_2(%arg0: i32) -> (i32, i32) {
    %c0_i32 = arith.constant 0 : i32
    %c0_i32_0 = arith.constant 0 : i32
    %c0_i32_1 = arith.constant 0 : i32
    return %c0_i32, %c0_i32_0 : i32, i32
  }
  func.func @transform_3(%arg0: i32) -> (i32, i32) {
    %c0_i32 = arith.constant 0 : i32
    %c0_i32_0 = arith.constant 0 : i32
    return %arg0, %c0_i32 : i32, i32
  }
}

</mosaic_0001>

<bundles_post_ra>
// kernel: tpu_custom_call.1
= control target key start
LH: loop header
LB: loop body
LE: loop exit
PB: predicated region body
PF: predicated region fallthrough
CT: control target
= control target key end

     0   :  { %8 = vsyncpa [#allocation3], 0  ;;  %s424_s0 = inlined_call_operand.hbm [shape: f32[4,128], index: 0, kind: input, shape index: {}]   ;;  %s425_s1 = inlined_call_operand.vmem [shape: f32[1,128], index: 1, kind: input, shape index: {}]   ;;  %s426_s2 = inlined_call_operand.vmem [shape: f32[1,128], index: 2, kind: input, shape index: {}]   ;;  %s427_s3 = inlined_call_operand.hbm [shape: f32[4,128], index: 3, kind: output, shape index: {}]  }
   0x1   :  { %9 = vsyncpa [#allocation4], 0  ;;  %s316_s12 = smov [#allocation2]   ;;  %s268_s16 = scalar_lea.hbm %s424_s0, 64 }
   0x2   :  { %s16_s13 = sshll.u32 %s316_s12, 4  ;;  %p269_p0 = scmp.ne.s32.totalorder %s424_s0, %s268_s16  ;;  %s17_s13 = int_to_ptr.vmem [resolvable:$true] %s16_s13 }
   0x3   :  { %p272_p1 = scmp.lt.u32.totalorder %s268_s16, %s424_s0 }
   0x5   :  { %p274_p2 = pnand %p272_p1, %p269_p0 }
   0x7   :  { %277 = shalt.err (!%p274_p2)
}
   0x8   :  { %s278_s21 = scalar_lea.vmem %s17_s13, 64  ;;  %p283_p4 = scmp.lt.s32.totalorder %s17_s13, %s17_s13 }
   0x9   :  { %p279_p3 = scmp.ne.s32.totalorder %s17_s13, %s278_s21  ;;  %p284_p5 = scmp.lt.s32.totalorder %s278_s21, %s278_s21 }
   0xb   :  { %p285_p6 = por %p284_p5, %p283_p4 }
   0xd   :  { %p286_p7 = pnand %p285_p6, %p279_p3 }
   0xf   :  { %289 = shalt.err (!%p286_p7)
}
  0x10   :  { %19 = dma.hbm_to_vmem [thread:$0]  %s424_s0, 64, %s17_s13, [#allocation3]  }
  0x11   :  { %312 = dma.done.wait [#allocation3], 64  }
  0x12   :  { %313 = vsyncadd [#allocation3], 4294967232  ;;  %v27_v0 = vld [vmem:[#allocation2] sm:$0xf]  ;;  %s317_s24 = smov 32   ;;  %s318_s25 = smov 96   ;;  %v44_v3 = vlaneseq }
  0x13   :  { %37 = vrot.lane.b32.xlu1 %v27_v0, %s317_s24  ;;  %31 = vrot.lane.b32.xlu0 %v27_v0, %s318_s25  ;;  %s319_s26 = smov 64   ;;  %v320_v1 = vmov 1983009808   ;;  %v321_v6 = vmov 1934713408   ;;  %vm74_vm0 = vcmask 257024  }
  0x14   :  { %v42_v2 = vunpack.c.l.s4 %v320_v1  ;;  %v45_v5 = vshrl.u32 %v44_v3, 7  ;;  %v59_v7 = vunpack.c.l.s4 %v321_v6  ;;  %v322_v23 = vmov 0.0   ;;  %s323_s30 = smov [#allocation5]  }
  0x15   :  { %vm206_vm9 = vcmask 261120   ;;  %vm208_vm10 = vcmask 523264   ;;  %vm210_vm11 = vcmask 785408   ;;  %s233_s4 = sshll.u32 %s323_s30, 4  ;;  %s234_s4 = int_to_ptr.vmem [resolvable:$true] %s233_s4 }
  0x16   :  { %v43_v4 = vunpack.c.0.s8 %v42_v2  ;;  %v60_v12 = vunpack.c.0.s8 %v59_v7  ;;  %s290_s5 = scalar_lea.vmem %s234_s4, 64  ;;  %p295_p9 = scmp.lt.s32.totalorder %s234_s4, %s234_s4 }
  0x17   :  { %34 = vrot.lane.b32.xlu0 %v27_v0, %s319_s26  ;;  %p291_p8 = scmp.ne.s32.totalorder %s234_s4, %s290_s5  ;;  %p296_p10 = scmp.lt.s32.totalorder %s290_s5, %s290_s5 }
  0x18   :  { %v359_v10 = vsub.s32 %v43_v4, %v45_v5  ;;  %v362_v16 = vsub.s32 %v60_v12, %v45_v5 }
  0x19   :  { %p297_p11 = por %p296_p10, %p295_p9 }
  0x1b   :  { %p298_p12 = pnand %p297_p11, %p291_p8 }
  0x85   :  { %v38_v8 = vpop.permute.xlu1 %37  ;;  %v32_v9 = vpop.permute.xlu0 %31 }
  0x86   :  { %v48_v11 = vcombine.low %v32_v9, %v38_v8 }
  0x88   :  { %v55_v15 = vrot.slane %v48_v11, %v359_v10 }
  0x89   :  { %v35_v13 = vpop.permute.xlu0 %34 }
  0x8a   :  { %v40_v14 = vcombine.low %v27_v0, %v35_v13 }
  0x8c   :  { %v47_v17 = vrot.slane %v40_v14, %v359_v10 }
  0x8e   :  { %v56_v18 = vcombine.low %v47_v17, %v55_v15  ;;  %v57_v19 = vcombine.high %v47_v17, %v55_v15 }
  0x90   :  { %v71_v20 = vrot.slane %v57_v19, %v362_v16  ;;  %v64_v21 = vrot.slane %v56_v18, %v362_v16 }
  0x92   :  { %v75_v22 = vsel %vm74_vm0, %v64_v21, 0.0  ;;  %v72_v24 = vcombine.high %v64_v21, %v322_v23  ;;  %v73_v25 = vcombine.high %v71_v20, %v322_v23  ;;  %v81_v28 = vsel %vm74_vm0, %v71_v20, 0.0 }
  0x93   :  { %76 = vadd.xlane.f32.xlu1 %v75_v22 }
  0x94   :  { %v78_v26 = vsel %vm74_vm0, %v72_v24, 0.0  ;;  %v84_v27 = vsel %vm74_vm0, %v73_v25, 0.0 }
  0x95   :  { %79 = vadd.xlane.f32.xlu0 %v78_v26 }
  0x97   :  { %85 = vadd.xlane.f32.xlu1 %v84_v27 }
  0x99   :  { %82 = vadd.xlane.f32.xlu0 %v81_v28 }
 0x120   :  { %v77_v29 = vpop.xlane.xlu1 %76 }
 0x121   :  { %v88_v30 = vmul.f32 0.03125, %v77_v29 }
 0x122   :  { %v80_v31 = vpop.xlane.xlu0 %79 }
 0x123   :  { %v373_v32 = vsub.f32 %v64_v21, %v88_v30  ;;  %v89_v33 = vmul.f32 0.03125, %v80_v31 }
 0x124   :  { %v86_v34 = vpop.xlane.xlu1 %85 }
 0x125   :  { %v375_v35 = vsub.f32 %v72_v24, %v89_v33  ;;  %v91_v36 = vmul.f32 0.03125, %v86_v34  ;;  %v96_v37 = vmul.f32 %v373_v32, %v373_v32 }
 0x126   :  { %v83_v38 = vpop.xlane.xlu0 %82 }
 0x127   :  { %v379_v39 = vsub.f32 %v73_v25, %v91_v36  ;;  %v90_v40 = vmul.f32 0.03125, %v83_v38  ;;  %v100_v41 = vsel %vm74_vm0, %v96_v37, 0.0  ;;  %v97_v42 = vmul.f32 %v375_v35, %v375_v35 }
 0x128   :  { %101 = vadd.xlane.f32.xlu0 %v100_v41 }
 0x129   :  { %v384_v43 = vsub.f32 %v71_v20, %v90_v40  ;;  %v103_v44 = vsel %vm74_vm0, %v97_v42, 0.0  ;;  %v99_v45 = vmul.f32 %v379_v39, %v379_v39 }
 0x12a   :  { %104 = vadd.xlane.f32.xlu1 %v103_v44 }
 0x12b   :  { %v98_v46 = vmul.f32 %v384_v43, %v384_v43  ;;  %v109_v47 = vsel %vm74_vm0, %v99_v45, 0.0 }
 0x12d   :  { %v106_v48 = vsel %vm74_vm0, %v98_v46, 0.0 }
 0x12e   :  { %110 = vadd.xlane.f32.xlu1 %v109_v47  ;;  %107 = vadd.xlane.f32.xlu0 %v106_v48 }
 0x1b5   :  { %v102_v49 = vpop.xlane.xlu0 %101 }
 0x1b6   :  { %v112_v50 = vmul.f32 0.03125, %v102_v49 }
 0x1b7   :  { %v105_v51 = vpop.xlane.xlu1 %104 }
 0x1b8   :  { %252 = vrsqrt.f32 %v112_v50  ;;  %v113_v52 = vmul.f32 0.03125, %v105_v51  ;;  %vm118_vm1 = vcmp.eq.f32.partialorder %v112_v50, inf  ;;  %v121_v61 = vand.u32 2147483648, %v112_v50 }
 0x1b9   :  { %vm120_vm2 = vcmp.eq.f32.partialorder %v112_v50, 0.0 }
 0x1ba   :  { %254 = vrsqrt.f32 %v113_v52  ;;  %vm125_vm3 = vcmp.eq.f32.partialorder %v113_v52, inf  ;;  %v128_v0 = vand.u32 2147483648, %v113_v52  ;;  %vm127_vm4 = vcmp.eq.f32.partialorder %v113_v52, 0.0 }
 0x1bb   :  { %v111_v53 = vpop.xlane.xlu1 %110  ;;  %v108_v54 = vpop.xlane.xlu0 %107 }
 0x1bc   :  { %v115_v55 = vmul.f32 0.03125, %v111_v53  ;;  %v114_v56 = vmul.f32 0.03125, %v108_v54 }
 0x1be   :  { %256 = vrsqrt.f32 %v115_v55  ;;  %vm139_vm5 = vcmp.eq.f32.partialorder %v115_v55, inf  ;;  %v142_v8 = vand.u32 2147483648, %v115_v55  ;;  %vm141_vm6 = vcmp.eq.f32.partialorder %v115_v55, 0.0 }
 0x1bf   :  { %258 = vrsqrt.f32 %v114_v56  ;;  %vm132_vm7 = vcmp.eq.f32.partialorder %v114_v56, inf  ;;  %v135_v12 = vand.u32 2147483648, %v114_v56  ;;  %vm134_vm8 = vcmp.eq.f32.partialorder %v114_v56, 0.0 }
 0x1c2   :  { %v253_v57 = vpop.eup %252 }
 0x1c3   :  { %v117_v58 = vmul.f32 %v253_v57, %v112_v50 }
 0x1c4   :  { %v255_v59 = vpop.eup %254 }
 0x1c5   :  { %v119_v60 = vsel %vm118_vm1, %v112_v50, %v117_v58  ;;  %v124_v62 = vmul.f32 %v255_v59, %v113_v52 }
 0x1c6   :  { %v122_v63 = vsel %vm120_vm2, %v121_v61, %v119_v60 }
 0x1c7   :  { %v126_v2 = vsel %vm125_vm3, %v113_v52, %v124_v62  ;;  %v144_v6 = vadd.f32 1e-06, %v122_v63 }
 0x1c8   :  { %v257_v1 = vpop.eup %256  ;;  %v129_v4 = vsel %vm127_vm4, %v128_v0, %v126_v2 }
 0x1c9   :  { %v259_v3 = vpop.eup %258  ;;  %v138_v5 = vmul.f32 %v257_v1, %v115_v55  ;;  %v145_v7 = vadd.f32 1e-06, %v129_v4 }
 0x1ca   :  { %v131_v9 = vmul.f32 %v259_v3, %v114_v56 }
 0x1cb   :  { %v140_v11 = vsel %vm139_vm5, %v115_v55, %v138_v5  ;;  %260 = vrcp.f32 %v145_v7 }
 0x1cc   :  { %v143_v13 = vsel %vm141_vm6, %v142_v8, %v140_v11  ;;  %v133_v14 = vsel %vm132_vm7, %v114_v56, %v131_v9  ;;  %262 = vrcp.f32 %v144_v6 }
 0x1cd   :  { %v147_v15 = vadd.f32 1e-06, %v143_v13  ;;  %v136_v17 = vsel %vm134_vm8, %v135_v12, %v133_v14 }
 0x1ce   :  { %v146_v18 = vadd.f32 1e-06, %v136_v17 }
 0x1cf   :  { %264 = vrcp.f32 %v147_v15 }
 0x1d0   :  { %266 = vrcp.f32 %v146_v18 }
 0x1d5   :  { %v261_v19 = vpop.eup %260 }
 0x1d6   :  { %v263_v20 = vpop.eup %262  ;;  %v157_v24 = vmul.f32 %v261_v19, %v375_v35 }
 0x1d7   :  { %v156_v26 = vmul.f32 %v263_v20, %v373_v32 }
 0x1d9   :  { %v265_v21 = vpop.eup %264 }
 0x1da   :  { %v267_v22 = vpop.eup %266  ;;  %v159_v25 = vmul.f32 %v265_v21, %v379_v39 }
 0x1db   :  { %v158_v27 = vmul.f32 %v267_v22, %v384_v43  ;;  %v243_v43 = vld [vmem:[%s426_s2] ss:$0 sm:$0xff] }
 0x1dc   :  { %v168_v28 = vcombine.low %v157_v24, %v159_v25 }
 0x1dd   :  { %v160_v29 = vcombine.low %v156_v26, %v158_v27 }
 0x1de   :  { %v175_v30 = vrot.slane %v168_v28, %v359_v10 }
 0x1df   :  { %v167_v31 = vrot.slane %v160_v29, %v359_v10 }
 0x1e1   :  { %v177_v33 = vcombine.high %v167_v31, %v175_v30  ;;  %v176_v34 = vcombine.low %v167_v31, %v175_v30 }
 0x1e3   :  { %v191_v36 = vrot.slane %v177_v33, %v362_v16  ;;  %v184_v37 = vrot.slane %v176_v34, %v362_v16  ;;  %v242_v16 = vld [vmem:[%s425_s1] ss:$0 sm:$0xff] }
 0x1e5   :  { %199 = vrot.lane.b32.xlu1 %v191_v36, %s319_s26  ;;  %v192_v35 = vcombine.high %v184_v37, %v322_v23  ;;  %v193_v32 = vcombine.high %v191_v36, %v322_v23 }
 0x1e7   :  { %195 = vrot.lane.b32.xlu0 %v192_v35, %s317_s24 }
 0x1e9   :  { %203 = vrot.lane.b32.xlu1 %v193_v32, %s318_s25 }
 0x257   :  { %v200_v38 = vpop.permute.xlu1 %199 }
 0x259   :  { %v196_v10 = vpop.permute.xlu0 %195 }
 0x25a   :  { %v207_v39 = vsel %vm206_vm9, %v184_v37, %v196_v10 }
 0x25b   :  { %v204_v40 = vpop.permute.xlu1 %203  ;;  %v209_v41 = vsel %vm208_vm10, %v207_v39, %v200_v38 }
 0x25c   :  { %v211_v42 = vsel %vm210_vm11, %v209_v41, %v204_v40 }
 0x25d   :  { %v218_v23 = vmul.f32 %v242_v16, %v211_v42 }
 0x25f   :  { %v225_v44 = vadd.f32 %v243_v43, %v218_v23 }
 0x261   :  { %226 = vst [vmem:[#allocation5] sm:$0xf] %v225_v44 }
 0x262   :  { %301 = shalt.err (!%p298_p12)
}
 0x263   :  { %s302_s7 = scalar_lea.hbm %s427_s3, 64 }
 0x264   :  { %p303_p13 = scmp.ne.s32.totalorder %s427_s3, %s302_s7  ;;  %p306_p0 = scmp.lt.u32.totalorder %s302_s7, %s427_s3 }
 0x266   :  { %p308_p1 = pnand %p306_p0, %p303_p13 }
 0x268   :  { %311 = shalt.err (!%p308_p1)
}
 0x269   :  { %236 = dma.vmem_to_hbm [thread:$0]  %s234_s4, 64, %s427_s3, [#allocation4]  }
 0x26a   :  { %314 = dma.done.wait [#allocation4], 64  }
 0x26b   :  { %315 = vsyncadd [#allocation4], 4294967232 }
 0x26c   :  { %240 = vsyncpa [#allocation3], 1 }
 0x26d   :  { %241 = vsyncpa [#allocation4], 1 }

</bundles_post_ra>
